<compile_context>
chip_gen: v5e
topology: v5e:2x2
jax: 0.10.0
libtpu: 0.0.40
codegen_flags: <defaults>
</compile_context>

<pallas_src>
import functools
import math

import jax
import jax.numpy as jnp
from jax.experimental import pallas as pl
from jax.experimental.pallas import tpu as pltpu


def _cd_matmul_kernel(p_ref, w_ref, o_ref):
    # p_ref: (TM, K)        im2col rows (batch*spatial on sublanes, K on lanes)
    # w_ref: (K, Cout_pad)  theta-folded weights, lane-dense, grid-resident
    # o_ref: (TM, Cout_pad) lane-dense output tile (unmasked stores)
    o_ref[...] = jnp.dot(
        p_ref[...], w_ref[...],
        preferred_element_type=jnp.float32).astype(o_ref.dtype)


def conv2d_cd(x_nchw, weight_oihw, theta=0.9):
    """Central-difference 3x3 conv (stride=1, padding=1, dilation=1, bias=False).

    x_nchw: (N, Cin, H, W) float32; weight_oihw: (Cout, Cin, 3, 3) float32.
    Returns (N, Cout, H, W) float32 matching the PyTorch Conv2d_cd forward.
    """
    # TODO(synk): groups != 1 and bias=True are not handled (module defaults).
    N, Cin, H, W = x_nchw.shape
    Cout = weight_oihw.shape[0]
    K = 9 * Cin
    M = N * H * W

    eff_theta = 0.0 if math.fabs(theta - 0.0) < 1e-8 else float(theta)

    # --- glue: fold theta into the center tap --------------------------------
    #   conv3x3(x, W) - theta * conv1x1(x, sum_hw W) == conv3x3(x, W_eff)
    w_hwio = jnp.transpose(weight_oihw, (2, 3, 1, 0))            # (3,3,Cin,Cout)
    w_eff = w_hwio.at[1, 1].add(-eff_theta * jnp.sum(w_hwio, axis=(0, 1)))
    w2d = w_eff.reshape(K, Cout)                                 # (9*Cin, Cout)

    # Lane-dense output / RHS: pad Cout up to a multiple of 128.
    cout_pad = -(-Cout // 128) * 128
    w2d = jnp.pad(w2d, ((0, 0), (0, cout_pad - Cout)))

    # --- glue: im2col, batch+spatial folded into the matmul M dimension ------
    x_nhwc = jnp.transpose(x_nchw, (0, 2, 3, 1))                 # (N,H,W,Cin)
    x_pad = jnp.pad(x_nhwc, ((0, 0), (1, 1), (1, 1), (0, 0)))    # (N,H+2,W+2,Cin)
    taps = [x_pad[:, kh:kh + H, kw:kw + W, :]
            for kh in range(3) for kw in range(3)]
    # Last-axis ordering is (kh, kw, cin), matching w2d's row order.
    patches = jnp.concatenate(taps, axis=-1).reshape(M, K)       # (M, 9*Cin)

    # --- tiling over M --------------------------------------------------------
    # TM=256 keeps each step a dense MXU matmul while leaving several
    # "parallel" grid steps for realistic shapes (so both v7x TensorCores get
    # work).  Shrink if double-buffered tiles would overshoot a conservative
    # VMEM budget, or if M itself is tiny.
    TM = 256
    bytes_per_row = (K + cout_pad) * 4
    while TM > 8 and (2 * TM * bytes_per_row + 2 * K * cout_pad * 4) > 12 * 1024 * 1024:
        TM //= 2
    if M < TM:
        TM = max(8, -(-M // 8) * 8)
    Mp = -(-M // TM) * TM
    if Mp != M:
        patches = jnp.pad(patches, ((0, Mp - M), (0, 0)))

    out2d = pl.pallas_call(
        _cd_matmul_kernel,
        out_shape=jax.ShapeDtypeStruct((Mp, cout_pad), jnp.float32),
        grid_spec=pltpu.PrefetchScalarGridSpec(
            num_scalar_prefetch=0,
            grid=(Mp // TM,),
            in_specs=[
                pl.BlockSpec((TM, K), lambda i: (i, 0)),
                pl.BlockSpec((K, cout_pad), lambda i: (0, 0)),
            ],
            out_specs=pl.BlockSpec((TM, cout_pad), lambda i: (i, 0)),
        ),
        compiler_params=pltpu.CompilerParams(
            dimension_semantics=("parallel",),
            vmem_limit_bytes=32 * 1024 * 1024,
        ),
    )(patches, w2d)

    # --- glue: back to NCHW ---------------------------------------------------
    out = out2d[:M, :Cout].reshape(N, H, W, Cout)
    return jnp.transpose(out, (0, 3, 1, 2))


def _reference(x_nchw, weight_oihw, theta):
    """Pure-JAX reference mirroring the PyTorch forward."""
    dn = jax.lax.conv_dimension_numbers(
        x_nchw.shape, weight_oihw.shape, ("NCHW", "OIHW", "NCHW"))
    out_normal = jax.lax.conv_general_dilated(
        x_nchw, weight_oihw, (1, 1), ((1, 1), (1, 1)), dimension_numbers=dn)
    if math.fabs(theta - 0.0) < 1e-8:
        return out_normal
    kernel_diff = weight_oihw.sum(axis=(2, 3))[:, :, None, None]
    out_diff = jax.lax.conv_general_dilated(
        x_nchw, kernel_diff, (1, 1), ((0, 0), (0, 0)), dimension_numbers=dn)
    return out_normal - theta * out_diff


if __name__ == "__main__":
    key = jax.random.PRNGKey(0)
    kx, kw = jax.random.split(key)

    N, Cin, H, W = 2, 4, 16, 16
    Cout = 8
    theta = 0.9

    x = jax.random.normal(kx, (N, Cin, H, W), dtype=jnp.float32)
    # Deterministic "Kaiming-ish" init for the conv weight (bias=False).
    fan_in = Cin * 3 * 3
    weight = jax.random.normal(kw, (Cout, Cin, 3, 3), dtype=jnp.float32)
    weight = weight * (1.0 / jnp.sqrt(fan_in))

    fwd = jax.jit(functools.partial(conv2d_cd, theta=theta))
    out = jax.block_until_ready(fwd(x, weight))
    ref = _reference(x, weight, theta)
    assert out.shape == (N, Cout, H, W)
    assert jnp.allclose(out, ref, atol=1e-4, rtol=1e-4), (
        float(jnp.max(jnp.abs(out - ref))))

    # theta == 0 path (module returns out_normal only) — the folding makes it free.
    fwd0 = jax.jit(functools.partial(conv2d_cd, theta=0.0))
    out0 = jax.block_until_ready(fwd0(x, weight))
    ref0 = _reference(x, weight, 0.0)
    assert jnp.allclose(out0, ref0, atol=1e-4, rtol=1e-4), (
        float(jnp.max(jnp.abs(out0 - ref0))))

    print("KERNEL_OK")
</pallas_src>

<mosaic_0001>
module attributes {stable_mosaic.version = 11 : i64} {
  func.func @_cd_matmul_kernel(%arg0: i32, %arg1: memref<256x36xf32, #tpu.memory_space<vmem>>, %arg2: memref<36x128xf32, #tpu.memory_space<vmem>>, %arg3: memref<256x128xf32, #tpu.memory_space<vmem>>) attributes {dimension_semantics = [#tpu.dimension_semantics<parallel>], iteration_bounds = array<i64: 2>, scalar_prefetch = 0 : i64, scratch_operands = 0 : i64, tpu.core_type = #tpu.core_type<tc>, window_params = [{transform_indices = @transform_0, window_bounds = array<i64: 256, 36>}, {pipeline_mode = #tpu.pipeline_mode<synchronous>, transform_indices = @transform_1, window_bounds = array<i64: 36, 128>}, {transform_indices = @transform_2, window_bounds = array<i64: 256, 128>}]} {
    %c0 = arith.constant 0 : index
    %c0_0 = arith.constant 0 : index
    %0 = vector.load %arg1[%c0, %c0_0] : memref<256x36xf32, #tpu.memory_space<vmem>>, vector<256x36xf32>
    %c0_1 = arith.constant 0 : index
    %c0_2 = arith.constant 0 : index
    %1 = vector.load %arg2[%c0_1, %c0_2] : memref<36x128xf32, #tpu.memory_space<vmem>>, vector<36x128xf32>
    %cst = arith.constant dense<0.000000e+00> : vector<256x128xf32>
    %2 = tpu.matmul %0, %1, %cst {dimension_numbers = #tpu.dot_dimension_numbers<[1], [0], [0], [1], [0, 0, 1, 1], [], []>} : vector<256x36xf32>, vector<36x128xf32>, vector<256x128xf32> -> vector<256x128xf32>
    %c0_3 = arith.constant 0 : index
    %c0_4 = arith.constant 0 : index
    %3 = vector.load %arg3[%c0_3, %c0_4] : memref<256x128xf32, #tpu.memory_space<vmem>>, vector<256x128xf32>
    tpu.vector_store %arg3[%c0_3, %c0_4], %2 {strides = array<i32>} : memref<256x128xf32, #tpu.memory_space<vmem>>, vector<256x128xf32>,
    return
  }
  func.func @transform_0(%arg0: i32) -> (i32, i32) {
    %c0_i32 = arith.constant 0 : i32
    %c0_i32_0 = arith.constant 0 : i32
    return %arg0, %c0_i32 : i32, i32
  }
  func.func @transform_1(%arg0: i32) -> (i32, i32) {
    %c0_i32 = arith.constant 0 : i32
    %c0_i32_0 = arith.constant 0 : i32
    %c0_i32_1 = arith.constant 0 : i32
    return %c0_i32, %c0_i32_0 : i32, i32
  }
  func.func @transform_2(%arg0: i32) -> (i32, i32) {
    %c0_i32 = arith.constant 0 : i32
    %c0_i32_0 = arith.constant 0 : i32
    return %arg0, %c0_i32 : i32, i32
  }
}

</mosaic_0001>

<bundles_post_ra>
// kernel: conv2d_cd.1
= control target key start
LH: loop header
LB: loop body
LE: loop exit
PB: predicated region body
PF: predicated region fallthrough
CT: control target
= control target key end

     0   :  { %s576_s9 = smov 0   ;;  %s715_s0 = inlined_call_operand.vmem [shape: f32[512,36], index: 0, kind: input, shape index: {}]   ;;  %s716_s1 = inlined_call_operand.vmem [shape: f32[36,128], index: 1, kind: input, shape index: {}]   ;;  %s717_s2 = inlined_call_operand.vmem [shape: f32[512,128], index: 2, kind: output, shape index: {}]  }
   0x1 LB: > { %s486_s10 = sadd.s32 4294967295, %s559_s9   ;;  %p490_p0 = scmp.ge.s32.totalorder %s559_s9, 1  ;;  %s559_s9 = sphi %s576_s9, %s12_s9  }
   0x2   : > { %p113_p1 = scmp.lt.s32.totalorder %s559_s9, 3 }
   0x4   : > { %p114_p2 = pnand %p490_p0, %p113_p1 }
   0x5   : > { %s491_s15 = sshll.u32 (!%p114_p2), %s486_s10, 5 }
   0x6   : > { %117 = sbr.rel (%p114_p2) target bundleno = 211 (0xd3), region = 28  ;;  %p136_p3 = scmp.lt.s32.totalorder (!%p114_p2), %s491_s15, 63 }
   0xb   : > { %v183_v0 = vld [vmem:[%s716_s1 + $0x20] sm:$0xf]  ;;  %vm281_vm0 = vcmask 1043456   ;;  %v182_v1 = vld [vmem:[%s716_s1 + $0x18] sm:$0xff]  ;;  %v181_v2 = vld [vmem:[%s716_s1 + $0x10] sm:$0xff]  ;;  %s719_s15 = smov (!%p136_p3, %s491_s15), 63 }
   0xc   : > { %531 = vmatpush.msk.msra.mxu2 %vm281_vm0, %v183_v0  ;;  %532 = vmatpush.msk.msra.mxu3 %vm281_vm0, %v183_v0  ;;  %v180_v3 = vld [vmem:[%s716_s1 + $0x8] sm:$0xff]  ;;  %s492_s20 = sshll.u32 %s719_s15, 3  ;;  %v179_v4 = vld [vmem:[%s716_s1] sm:$0xff]  ;;  %vm184_vm1 = vcmask 293888  }
   0xd   : > { %495 = vmatpush.msk.msra.mxu0 %vm281_vm0, %v183_v0  ;;  %530 = vmatpush.msk.msra.mxu1 %vm281_vm0, %v183_v0  ;;  %s607_s25 = scalar_lea.vmem %s715_s0, %s492_s20  ;;  %s678_s28 = scalar_lea.vmem %s717_s2, %s492_s20 }
   0xe   : > { %534 = vmatpush.msra.mxu2 %v182_v1  ;;  %535 = vmatpush.msra.mxu3 %v182_v1  ;;  %v163_v5 = vld [vmem:[%s607_s25 + $0x80] sm:$0xff]  ;;  %v164_v9 = vld [vmem:[%s607_s25 + $0x88] sm:$0xff]  ;;  %v165_v13 = vld [vmem:[%s607_s25 + $0x90] sm:$0xff] }
   0xf   : > { %297 = vmatpush.msra.mxu0 %v182_v1  ;;  %533 = vmatpush.msra.mxu1 %v182_v1  ;;  %v171_v6 = vld [vmem:[%s607_s25 + $0xc0] sm:$0xff]  ;;  %v172_v10 = vld [vmem:[%s607_s25 + $0xc8] sm:$0xff]  ;;  %v173_v14 = vld [vmem:[%s607_s25 + $0xd0] sm:$0xff] }
  0x10   : > { %537 = vmatpush.msra.mxu2 %v181_v2  ;;  %538 = vmatpush.msra.mxu3 %v181_v2  ;;  %v147_v7 = vld [vmem:[%s607_s25] sm:$0xff]  ;;  %v148_v11 = vld [vmem:[%s607_s25 + $0x8] sm:$0xff]  ;;  %v149_v15 = vld [vmem:[%s607_s25 + $0x10] sm:$0xff] }
  0x11   : > { %298 = vmatpush.msra.mxu0 %v181_v2  ;;  %536 = vmatpush.msra.mxu1 %v181_v2  ;;  %v155_v8 = vld [vmem:[%s607_s25 + $0x40] sm:$0xff]  ;;  %v156_v12 = vld [vmem:[%s607_s25 + $0x48] sm:$0xff]  ;;  %v157_v16 = vld [vmem:[%s607_s25 + $0x50] sm:$0xff] }
  0x12   : > { %540 = vmatpush.msra.mxu2 %v180_v3  ;;  %541 = vmatpush.msra.mxu3 %v180_v3  ;;  %v166_v17 = vld [vmem:[%s607_s25 + $0x98] sm:$0xff]  ;;  %v167_v21 = vld [vmem:[%s607_s25 + $0xa0] sm:$0xff]  ;;  %v168_v25 = vld [vmem:[%s607_s25 + $0xa8] sm:$0xff] }
  0x13   : > { %299 = vmatpush.msra.mxu0 %v180_v3  ;;  %539 = vmatpush.msra.mxu1 %v180_v3  ;;  %v174_v18 = vld [vmem:[%s607_s25 + $0xd8] sm:$0xff]  ;;  %v175_v22 = vld [vmem:[%s607_s25 + $0xe0] sm:$0xff]  ;;  %v176_v26 = vld [vmem:[%s607_s25 + $0xe8] sm:$0xff] }
  0x14   : > { %543 = vmatpush.msra.mxu2 %v179_v4  ;;  %544 = vmatpush.msra.mxu3 %v179_v4  ;;  %v150_v19 = vld [vmem:[%s607_s25 + $0x18] sm:$0xff]  ;;  %v151_v23 = vld [vmem:[%s607_s25 + $0x20] sm:$0xff]  ;;  %v152_v27 = vld [vmem:[%s607_s25 + $0x28] sm:$0xff] }
  0x15   : > { %512 = vmatmul.msk.f32.vlgmr.msra.gmra.mxu2 %vm184_vm1, %v163_v5  ;;  %520 = vmatmul.msk.f32.vlgmr.msra.gmra.mxu3 %vm184_vm1, %v171_v6  ;;  %v158_v20 = vld [vmem:[%s607_s25 + $0x58] sm:$0xff]  ;;  %v159_v24 = vld [vmem:[%s607_s25 + $0x60] sm:$0xff]  ;;  %v160_v28 = vld [vmem:[%s607_s25 + $0x68] sm:$0xff] }
  0x16   : > { %300 = vmatpush.msra.mxu0 %v179_v4  ;;  %542 = vmatpush.msra.mxu1 %v179_v4  ;;  %v169_v29 = vld [vmem:[%s607_s25 + $0xb0] sm:$0xff]  ;;  %v170_v33 = vld [vmem:[%s607_s25 + $0xb8] sm:$0xff] }
  0x17   : > { %496 = vmatmul.msk.f32.vlgmr.msra.gmra.mxu0 %vm184_vm1, %v147_v7  ;;  %504 = vmatmul.msk.f32.vlgmr.msra.gmra.mxu1 %vm184_vm1, %v155_v8  ;;  %v177_v30 = vld [vmem:[%s607_s25 + $0xf0] sm:$0xff]  ;;  %v178_v34 = vld [vmem:[%s607_s25 + $0xf8] sm:$0xff] }
  0x18   : > { %v153_v31 = vld [vmem:[%s607_s25 + $0x30] sm:$0xff]  ;;  %v154_v35 = vld [vmem:[%s607_s25 + $0x38] sm:$0xff] }
  0x19   : > { %v161_v32 = vld [vmem:[%s607_s25 + $0x70] sm:$0xff]  ;;  %v162_v36 = vld [vmem:[%s607_s25 + $0x78] sm:$0xff] }
  0x1d   : > { %513 = vmatmul.msk.f32.gmra.mxu2 %vm184_vm1, %v164_v9  ;;  %521 = vmatmul.msk.f32.gmra.mxu3 %vm184_vm1, %v172_v10 }
  0x1f   : > { %497 = vmatmul.msk.f32.gmra.mxu0 %vm184_vm1, %v148_v11  ;;  %505 = vmatmul.msk.f32.gmra.mxu1 %vm184_vm1, %v156_v12 }
  0x25   : > { %514 = vmatmul.msk.f32.gmra.mxu2 %vm184_vm1, %v165_v13  ;;  %522 = vmatmul.msk.f32.gmra.mxu3 %vm184_vm1, %v173_v14 }
  0x27   : > { %498 = vmatmul.msk.f32.gmra.mxu0 %vm184_vm1, %v149_v15  ;;  %506 = vmatmul.msk.f32.gmra.mxu1 %vm184_vm1, %v157_v16 }
  0x2d   : > { %515 = vmatmul.msk.f32.gmra.mxu2 %vm184_vm1, %v166_v17  ;;  %523 = vmatmul.msk.f32.gmra.mxu3 %vm184_vm1, %v174_v18 }
  0x2f   : > { %499 = vmatmul.msk.f32.gmra.mxu0 %vm184_vm1, %v150_v19  ;;  %507 = vmatmul.msk.f32.gmra.mxu1 %vm184_vm1, %v158_v20 }
  0x35   : > { %516 = vmatmul.msk.f32.gmra.mxu2 %vm184_vm1, %v167_v21  ;;  %524 = vmatmul.msk.f32.gmra.mxu3 %vm184_vm1, %v175_v22 }
  0x37   : > { %500 = vmatmul.msk.f32.gmra.mxu0 %vm184_vm1, %v151_v23  ;;  %508 = vmatmul.msk.f32.gmra.mxu1 %vm184_vm1, %v159_v24 }
  0x3d   : > { %517 = vmatmul.msk.f32.gmra.mxu2 %vm184_vm1, %v168_v25  ;;  %525 = vmatmul.msk.f32.gmra.mxu3 %vm184_vm1, %v176_v26 }
  0x3f   : > { %501 = vmatmul.msk.f32.gmra.mxu0 %vm184_vm1, %v152_v27  ;;  %509 = vmatmul.msk.f32.gmra.mxu1 %vm184_vm1, %v160_v28 }
  0x45   : > { %518 = vmatmul.msk.f32.gmra.mxu2 %vm184_vm1, %v169_v29  ;;  %526 = vmatmul.msk.f32.gmra.mxu3 %vm184_vm1, %v177_v30 }
  0x47   : > { %502 = vmatmul.msk.f32.gmra.mxu0 %vm184_vm1, %v153_v31  ;;  %510 = vmatmul.msk.f32.gmra.mxu1 %vm184_vm1, %v161_v32 }
  0x4d   : > { %519 = vmatmul.msk.f32.gmra.mxu2 %vm184_vm1, %v170_v33  ;;  %527 = vmatmul.msk.f32.gmra.mxu3 %vm184_vm1, %v178_v34 }
  0x4f   : > { %503 = vmatmul.msk.f32.gmra.mxu0 %vm184_vm1, %v154_v35  ;;  %511 = vmatmul.msk.f32.gmra.mxu1 %vm184_vm1, %v162_v36 }
  0x94   : > { %v302_v37 = vpop.f32.mrf.mxu0  ;;  %v326_v38 = vpop.f32.mrf.mxu1 }
  0x95   : > { %398 = vst [vmem:[%s678_s28] sm:$0xff] %v302_v37 }
  0x96   : > { %406 = vst [vmem:[%s678_s28 + $0x40] sm:$0xff] %v326_v38 }
  0x98   : > { %v350_v39 = vpop.f32.mrf.mxu2  ;;  %v374_v40 = vpop.f32.mrf.mxu3 }
  0x99   : > { %414 = vst [vmem:[%s678_s28 + $0x80] sm:$0xff] %v350_v39 }
  0x9a   : > { %422 = vst [vmem:[%s678_s28 + $0xc0] sm:$0xff] %v374_v40 }
  0x9c   : > { %v305_v41 = vpop.f32.mrf.mxu0  ;;  %v329_v42 = vpop.f32.mrf.mxu1 }
  0x9d   : > { %399 = vst [vmem:[%s678_s28 + $0x8] sm:$0xff] %v305_v41 }
  0x9e   : > { %407 = vst [vmem:[%s678_s28 + $0x48] sm:$0xff] %v329_v42 }
  0xa0   : > { %v353_v43 = vpop.f32.mrf.mxu2  ;;  %v377_v44 = vpop.f32.mrf.mxu3 }
  0xa1   : > { %415 = vst [vmem:[%s678_s28 + $0x88] sm:$0xff] %v353_v43 }
  0xa2   : > { %423 = vst [vmem:[%s678_s28 + $0xc8] sm:$0xff] %v377_v44 }
  0xa4   : > { %v308_v45 = vpop.f32.mrf.mxu0  ;;  %v332_v46 = vpop.f32.mrf.mxu1 }
  0xa5   : > { %400 = vst [vmem:[%s678_s28 + $0x10] sm:$0xff] %v308_v45 }
  0xa6   : > { %408 = vst [vmem:[%s678_s28 + $0x50] sm:$0xff] %v332_v46 }
  0xa8   : > { %v356_v47 = vpop.f32.mrf.mxu2  ;;  %v380_v48 = vpop.f32.mrf.mxu3 }
  0xa9   : > { %416 = vst [vmem:[%s678_s28 + $0x90] sm:$0xff] %v356_v47 }
  0xaa   : > { %424 = vst [vmem:[%s678_s28 + $0xd0] sm:$0xff] %v380_v48 }
  0xac   : > { %v311_v49 = vpop.f32.mrf.mxu0  ;;  %v335_v50 = vpop.f32.mrf.mxu1 }
  0xad   : > { %401 = vst [vmem:[%s678_s28 + $0x18] sm:$0xff] %v311_v49 }
  0xae   : > { %409 = vst [vmem:[%s678_s28 + $0x58] sm:$0xff] %v335_v50 }
  0xb0   : > { %v359_v51 = vpop.f32.mrf.mxu2  ;;  %v383_v52 = vpop.f32.mrf.mxu3 }
  0xb1   : > { %417 = vst [vmem:[%s678_s28 + $0x98] sm:$0xff] %v359_v51 }
  0xb2   : > { %425 = vst [vmem:[%s678_s28 + $0xd8] sm:$0xff] %v383_v52 }
  0xb4   : > { %v314_v53 = vpop.f32.mrf.mxu0  ;;  %v338_v54 = vpop.f32.mrf.mxu1 }
  0xb5   : > { %402 = vst [vmem:[%s678_s28 + $0x20] sm:$0xff] %v314_v53 }
  0xb6   : > { %410 = vst [vmem:[%s678_s28 + $0x60] sm:$0xff] %v338_v54 }
  0xb8   : > { %v362_v55 = vpop.f32.mrf.mxu2  ;;  %v386_v56 = vpop.f32.mrf.mxu3 }
  0xb9   : > { %418 = vst [vmem:[%s678_s28 + $0xa0] sm:$0xff] %v362_v55 }
  0xba   : > { %426 = vst [vmem:[%s678_s28 + $0xe0] sm:$0xff] %v386_v56 }
  0xbc   : > { %v317_v57 = vpop.f32.mrf.mxu0  ;;  %v341_v58 = vpop.f32.mrf.mxu1 }
  0xbd   : > { %403 = vst [vmem:[%s678_s28 + $0x28] sm:$0xff] %v317_v57 }
  0xbe   : > { %411 = vst [vmem:[%s678_s28 + $0x68] sm:$0xff] %v341_v58 }
  0xc0   : > { %v365_v59 = vpop.f32.mrf.mxu2  ;;  %v389_v60 = vpop.f32.mrf.mxu3 }
  0xc1   : > { %419 = vst [vmem:[%s678_s28 + $0xa8] sm:$0xff] %v365_v59 }
  0xc2   : > { %427 = vst [vmem:[%s678_s28 + $0xe8] sm:$0xff] %v389_v60 }
  0xc4   : > { %v320_v61 = vpop.f32.mrf.mxu0  ;;  %v344_v62 = vpop.f32.mrf.mxu1 }
  0xc5   : > { %404 = vst [vmem:[%s678_s28 + $0x30] sm:$0xff] %v320_v61 }
  0xc6   : > { %412 = vst [vmem:[%s678_s28 + $0x70] sm:$0xff] %v344_v62 }
  0xc8   : > { %v368_v63 = vpop.f32.mrf.mxu2  ;;  %v392_v0 = vpop.f32.mrf.mxu3 }
  0xc9   : > { %420 = vst [vmem:[%s678_s28 + $0xb0] sm:$0xff] %v368_v63 }
  0xca   : > { %428 = vst [vmem:[%s678_s28 + $0xf0] sm:$0xff] %v392_v0 }
  0xcc   : > { %v323_v1 = vpop.f32.mrf.mxu0  ;;  %v347_v2 = vpop.f32.mrf.mxu1 }
  0xcd   : > { %405 = vst [vmem:[%s678_s28 + $0x38] sm:$0xff] %v323_v1 }
  0xce   : > { %413 = vst [vmem:[%s678_s28 + $0x78] sm:$0xff] %v347_v2 }
  0xd0   : > { %v371_v3 = vpop.f32.mrf.mxu2  ;;  %v395_v4 = vpop.f32.mrf.mxu3 }
  0xd1   : > { %421 = vst [vmem:[%s678_s28 + $0xb8] sm:$0xff] %v371_v3 }
  0xd2   : > { %429 = vst [vmem:[%s678_s28 + $0xf8] sm:$0xff] %v395_v4 }
  0xd3 PF: > { %s12_s9 = sadd.s32 1, %s559_s9  }
  0xd4   : > { %p9_p4 = scmp.ge.s32.totalorder %s12_s9, 4  }
  0xd6   :  { %11 = sbr.rel (!%p9_p4) target bundleno = 1 (0x1), region = 58 }

</bundles_post_ra>
